<compile_context>
chip_gen: v7x
topology: tpu7x:2x2x1
jax: 0.10.0
libtpu: 0.0.40
codegen_flags: <defaults>
</compile_context>

<pallas_src>
import functools
import math

import jax
import jax.numpy as jnp
from jax import lax
from jax.experimental import pallas as pl
from jax.experimental.pallas import tpu as pltpu


def _round_up(x, m):
    return (x + m - 1) // m * m


def _lora_kernel(x_ref, w_ref, b_ref, a_ref, bl_ref, o_ref, acc_ref, lo_ref, *,
                 scaling):
    j = pl.program_id(1)
    k = pl.program_id(2)
    nk = pl.num_programs(2)

    @pl.when(k == 0)
    def _init_acc():
        acc_ref[...] = jnp.zeros_like(acc_ref)

    @pl.when(jnp.logical_and(j == 0, k == 0))
    def _init_lo():
        lo_ref[...] = jnp.zeros_like(lo_ref)

    x = x_ref[...].astype(jnp.bfloat16)
    w = w_ref[...].astype(jnp.bfloat16)

    # Main path: x_tile [tm, tk] . W_tile [tn, tk], contracting the K axis (no transpose
    # materialized -- W stays in its [out_dim, in_dim] layout).
    acc_ref[...] += lax.dot_general(
        x, w, (((1,), (1,)), ((), ())), preferred_element_type=jnp.float32)

    # LoRA first matmul depends only on the (i, k) tiles: compute it once (j == 0) and
    # keep it resident in scratch for the remaining N tiles of this M row.
    @pl.when(j == 0)
    def _lora_a():
        a = a_ref[...].astype(jnp.bfloat16)
        lo_ref[...] += lax.dot_general(
            x, a, (((1,), (1,)), ((), ())), preferred_element_type=jnp.float32)

    # Epilogue on the last K step: tiny LoRA second matmul, scaling on the [tm, rank]
    # intermediate, bias add, final cast/store.
    @pl.when(k == nk - 1)
    def _epilogue():
        lo = (lo_ref[...] * scaling).astype(jnp.bfloat16)
        bl = bl_ref[...].astype(jnp.bfloat16)
        lora = lax.dot_general(
            lo, bl, (((1,), (1,)), ((), ())), preferred_element_type=jnp.float32)
        o_ref[...] = (acc_ref[...] + lora + b_ref[...]).astype(o_ref.dtype)


def lora_forward(x, w, b, a, b_lora, *, alpha, rank,
                 tm=256, tn=512, tk=1024, vmem_limit_bytes=32 * 1024 * 1024):
    """x: [M, in_dim]; w: [out_dim, in_dim]; b: [out_dim];
    a: [rank, in_dim]; b_lora: [out_dim, rank].  Same layouts as the PyTorch module."""
    scaling = float(alpha) / float(rank)
    M, in_dim = x.shape
    out_dim = w.shape[0]
    assert w.shape == (out_dim, in_dim)
    assert a.shape == (rank, in_dim)
    assert b_lora.shape == (out_dim, rank)

    # Tile sizes: never larger than the (padded) problem, lane-dense (multiples of 128)
    # on the N/K axes, sublane-aligned on M.
    tm = min(tm, _round_up(M, 8))
    tn = min(tn, _round_up(out_dim, 128))
    tk = min(tk, _round_up(in_dim, 128))

    m_pad = _round_up(M, tm)
    n_pad = _round_up(out_dim, tn)
    k_pad = _round_up(in_dim, tk)
    r_pad = _round_up(rank, 8)

    def pad2(arr, rows, cols):
        pr, pc = rows - arr.shape[0], cols - arr.shape[1]
        return arr if (pr == 0 and pc == 0) else jnp.pad(arr, ((0, pr), (0, pc)))

    x_p = pad2(x, m_pad, k_pad)
    w_p = pad2(w, n_pad, k_pad)
    a_p = pad2(a, r_pad, k_pad)
    bl_p = pad2(b_lora, n_pad, r_pad)
    b_p = pad2(b.reshape(1, out_dim), 1, n_pad)

    grid = (m_pad // tm, n_pad // tn, k_pad // tk)
    kernel = functools.partial(_lora_kernel, scaling=scaling)

    out = pl.pallas_call(
        kernel,
        out_shape=jax.ShapeDtypeStruct((m_pad, n_pad), x.dtype),
        grid_spec=pltpu.PrefetchScalarGridSpec(
            num_scalar_prefetch=0,
            grid=grid,
            in_specs=[
                pl.BlockSpec((tm, tk), lambda i, j, k: (i, k)),       # x       [M, in]
                pl.BlockSpec((tn, tk), lambda i, j, k: (j, k)),       # W       [out, in]
                pl.BlockSpec((1, tn), lambda i, j, k: (0, j)),        # bias    [1, out]
                pl.BlockSpec((r_pad, tk), lambda i, j, k: (0, k)),    # A       [rank, in]
                pl.BlockSpec((tn, r_pad), lambda i, j, k: (j, 0)),    # B_lora  [out, rank]
            ],
            out_specs=pl.BlockSpec((tm, tn), lambda i, j, k: (i, j)),
            scratch_shapes=[
                pltpu.VMEM((tm, tn), jnp.float32),      # main f32 accumulator
                pltpu.VMEM((tm, r_pad), jnp.float32),   # x @ A^T accumulator
            ],
        ),
        compiler_params=pltpu.CompilerParams(
            # M is safe to shard across TensorCores; N stays "arbitrary" because the
            # lo scratch computed at j == 0 is reused by the later N tiles of the row.
            dimension_semantics=("parallel", "arbitrary", "arbitrary"),
            vmem_limit_bytes=vmem_limit_bytes,
        ),
    )(x_p, w_p, b_p, a_p, bl_p)

    return out[:M, :out_dim]


def _reference(x, w, b, a, b_lora, scaling):
    # Matches the kernel's numerics: bf16 MXU inputs, f32 accumulation/epilogue.
    f32 = jnp.float32
    xb = x.astype(jnp.bfloat16).astype(f32)
    wb = w.astype(jnp.bfloat16).astype(f32)
    ab = a.astype(jnp.bfloat16).astype(f32)
    blb = b_lora.astype(jnp.bfloat16).astype(f32)
    lo = (xb @ ab.T) * scaling
    lo = lo.astype(jnp.bfloat16).astype(f32)
    return xb @ wb.T + b + lo @ blb.T


if __name__ == "__main__":
    # Small shapes implied by the module: a Linear over a hidden dim with a rank-4 adapter.
    batch, in_dim, out_dim, rank, alpha = 8, 32, 32, 4, 8.0
    scaling = alpha / rank

    key = jax.random.PRNGKey(0)
    kx, kw, kb, ka, kbl = jax.random.split(key, 5)

    x = jax.random.normal(kx, (batch, in_dim), dtype=jnp.float32)

    # Pretrained nn.Linear default init: U(-1/sqrt(in_dim), 1/sqrt(in_dim))
    bound = 1.0 / math.sqrt(in_dim)
    w = jax.random.uniform(kw, (out_dim, in_dim), minval=-bound, maxval=bound,
                           dtype=jnp.float32)
    b = jax.random.uniform(kb, (out_dim,), minval=-bound, maxval=bound,
                           dtype=jnp.float32)

    # LoRA A: kaiming_normal_ (fan_in = in_dim, gain=sqrt(2)) -> std = sqrt(2/in_dim)
    a = jax.random.normal(ka, (rank, in_dim), dtype=jnp.float32) * math.sqrt(2.0 / in_dim)
    # LoRA B: module init is zeros.
    b_lora_init = jnp.zeros((out_dim, rank), dtype=jnp.float32)
    # A non-zero B (as after training) to actually exercise the LoRA path.
    b_lora_trained = 0.1 * jax.random.normal(kbl, (out_dim, rank), dtype=jnp.float32)

    for b_lora in (b_lora_init, b_lora_trained):
        out = lora_forward(x, w, b, a, b_lora, alpha=alpha, rank=rank)
        out = jax.block_until_ready(out)
        ref = _reference(x, w, b, a, b_lora, scaling)
        assert out.shape == (batch, out_dim)
        assert jnp.allclose(out, ref, atol=2e-3, rtol=2e-3), "mismatch vs reference"

    print("KERNEL_OK")
</pallas_src>

<mosaic_0001>
module attributes {stable_mosaic.version = 11 : i64} {
  func.func @_lora_kernel(%arg0: i32, %arg1: i32, %arg2: i32, %arg3: memref<8x128xf32, #tpu.memory_space<vmem>>, %arg4: memref<128x128xf32, #tpu.memory_space<vmem>>, %arg5: memref<1x128xf32, #tpu.memory_space<vmem>>, %arg6: memref<8x128xf32, #tpu.memory_space<vmem>>, %arg7: memref<128x8xf32, #tpu.memory_space<vmem>>, %arg8: memref<8x128xf32, #tpu.memory_space<vmem>>, %arg9: memref<8x128xf32, #tpu.memory_space<vmem>>, %arg10: memref<8x8xf32, #tpu.memory_space<vmem>>) attributes {dimension_semantics = [#tpu.dimension_semantics<parallel>, #tpu.dimension_semantics<arbitrary>, #tpu.dimension_semantics<arbitrary>], iteration_bounds = array<i64: 1, 1, 1>, scalar_prefetch = 0 : i64, scratch_operands = 2 : i64, tpu.core_type = #tpu.core_type<tc>, window_params = [{transform_indices = @transform_0, window_bounds = array<i64: 8, 128>}, {transform_indices = @transform_1, window_bounds = array<i64: 128, 128>}, {transform_indices = @transform_2, window_bounds = array<i64: 1, 128>}, {transform_indices = @transform_3, window_bounds = array<i64: 8, 128>}, {transform_indices = @transform_4, window_bounds = array<i64: 128, 8>}, {transform_indices = @transform_5, window_bounds = array<i64: 8, 128>}]} {
    %c0_i32 = arith.constant 0 : i32
    %0 = arith.cmpi eq, %arg2, %c0_i32 : i32
    %1 = arith.extui %0 : i1 to i32
    %c0_i32_0 = arith.constant 0 : i32
    %2 = arith.cmpi ne, %1, %c0_i32_0 : i32
    scf.if %2 {
      %cst_15 = arith.constant 0.000000e+00 : f32
      %22 = vector.broadcast %cst_15 : f32 to vector<8x128xf32>
      %c0_16 = arith.constant 0 : index
      %c0_17 = arith.constant 0 : index
      %23 = vector.load %arg9[%c0_16, %c0_17] : memref<8x128xf32, #tpu.memory_space<vmem>>, vector<8x128xf32>
      tpu.vector_store %arg9[%c0_16, %c0_17], %22 {strides = array<i32>} : memref<8x128xf32, #tpu.memory_space<vmem>>, vector<8x128xf32>,
    } else {
    }
    %c0_i32_1 = arith.constant 0 : i32
    %3 = arith.cmpi eq, %arg1, %c0_i32_1 : i32
    %c0_i32_2 = arith.constant 0 : i32
    %4 = arith.cmpi eq, %arg2, %c0_i32_2 : i32
    %5 = arith.andi %3, %4 : i1
    %6 = arith.extui %5 : i1 to i32
    %c0_i32_3 = arith.constant 0 : i32
    %7 = arith.cmpi ne, %6, %c0_i32_3 : i32
    scf.if %7 {
      %cst_15 = arith.constant 0.000000e+00 : f32
      %22 = vector.broadcast %cst_15 : f32 to vector<8x8xf32>
      %c0_16 = arith.constant 0 : index
      %c0_17 = arith.constant 0 : index
      %23 = vector.load %arg10[%c0_16, %c0_17] : memref<8x8xf32, #tpu.memory_space<vmem>>, vector<8x8xf32>
      tpu.vector_store %arg10[%c0_16, %c0_17], %22 {strides = array<i32>} : memref<8x8xf32, #tpu.memory_space<vmem>>, vector<8x8xf32>,
    } else {
    }
    %c0 = arith.constant 0 : index
    %c0_4 = arith.constant 0 : index
    %8 = vector.load %arg3[%c0, %c0_4] : memref<8x128xf32, #tpu.memory_space<vmem>>, vector<8x128xf32>
    %9 = arith.truncf %8 : vector<8x128xf32> to vector<8x128xbf16>
    %c0_5 = arith.constant 0 : index
    %c0_6 = arith.constant 0 : index
    %10 = vector.load %arg4[%c0_5, %c0_6] : memref<128x128xf32, #tpu.memory_space<vmem>>, vector<128x128xf32>
    %11 = arith.truncf %10 : vector<128x128xf32> to vector<128x128xbf16>
    %c0_7 = arith.constant 0 : index
    %c0_8 = arith.constant 0 : index
    %12 = vector.load %arg9[%c0_7, %c0_8] : memref<8x128xf32, #tpu.memory_space<vmem>>, vector<8x128xf32>
    %cst = arith.constant dense<0.000000e+00> : vector<8x128xf32>
    %13 = tpu.matmul %9, %11, %cst {dimension_numbers = #tpu.dot_dimension_numbers<[1], [1], [0], [0], [0, 0, 1, 0], [], []>} : vector<8x128xbf16>, vector<128x128xbf16>, vector<8x128xf32> -> vector<8x128xf32>
    %14 = arith.addf %12, %13 : vector<8x128xf32>
    %c0_9 = arith.constant 0 : index
    %c0_10 = arith.constant 0 : index
    %15 = vector.load %arg9[%c0_9, %c0_10] : memref<8x128xf32, #tpu.memory_space<vmem>>, vector<8x128xf32>
    tpu.vector_store %arg9[%c0_9, %c0_10], %14 {strides = array<i32>} : memref<8x128xf32, #tpu.memory_space<vmem>>, vector<8x128xf32>,
    %c0_i32_11 = arith.constant 0 : i32
    %16 = arith.cmpi eq, %arg1, %c0_i32_11 : i32
    %17 = arith.extui %16 : i1 to i32
    %c0_i32_12 = arith.constant 0 : i32
    %18 = arith.cmpi ne, %17, %c0_i32_12 : i32
    scf.if %18 {
      %c0_15 = arith.constant 0 : index
      %c0_16 = arith.constant 0 : index
      %22 = vector.load %arg6[%c0_15, %c0_16] : memref<8x128xf32, #tpu.memory_space<vmem>>, vector<8x128xf32>
      %23 = arith.truncf %22 : vector<8x128xf32> to vector<8x128xbf16>
      %c0_17 = arith.constant 0 : index
      %c0_18 = arith.constant 0 : index
      %24 = vector.load %arg10[%c0_17, %c0_18] : memref<8x8xf32, #tpu.memory_space<vmem>>, vector<8x8xf32>
      %cst_19 = arith.constant dense<0.000000e+00> : vector<8x8xf32>
      %25 = tpu.matmul %9, %23, %cst_19 {dimension_numbers = #tpu.dot_dimension_numbers<[1], [1], [0], [0], [0, 0, 1, 0], [], []>} : vector<8x128xbf16>, vector<8x128xbf16>, vector<8x8xf32> -> vector<8x8xf32>
      %26 = arith.addf %24, %25 : vector<8x8xf32>
      %c0_20 = arith.constant 0 : index
      %c0_21 = arith.constant 0 : index
      %27 = vector.load %arg10[%c0_20, %c0_21] : memref<8x8xf32, #tpu.memory_space<vmem>>, vector<8x8xf32>
      tpu.vector_store %arg10[%c0_20, %c0_21], %26 {strides = array<i32>} : memref<8x8xf32, #tpu.memory_space<vmem>>, vector<8x8xf32>,
    } else {
    }
    %c0_i32_13 = arith.constant 0 : i32
    %19 = arith.cmpi eq, %arg2, %c0_i32_13 : i32
    %20 = arith.extui %19 : i1 to i32
    %c0_i32_14 = arith.constant 0 : i32
    %21 = arith.cmpi ne, %20, %c0_i32_14 : i32
    scf.if %21 {
      %c0_15 = arith.constant 0 : index
      %c0_16 = arith.constant 0 : index
      %22 = vector.load %arg10[%c0_15, %c0_16] : memref<8x8xf32, #tpu.memory_space<vmem>>, vector<8x8xf32>
      %cst_17 = arith.constant 2.000000e+00 : f32
      %23 = vector.broadcast %cst_17 : f32 to vector<8x8xf32>
      %24 = arith.mulf %22, %23 : vector<8x8xf32>
      %25 = arith.truncf %24 : vector<8x8xf32> to vector<8x8xbf16>
      %c0_18 = arith.constant 0 : index
      %c0_19 = arith.constant 0 : index
      %26 = vector.load %arg7[%c0_18, %c0_19] : memref<128x8xf32, #tpu.memory_space<vmem>>, vector<128x8xf32>
      %27 = arith.truncf %26 : vector<128x8xf32> to vector<128x8xbf16>
      %cst_20 = arith.constant dense<0.000000e+00> : vector<8x128xf32>
      %28 = tpu.matmul %25, %27, %cst_20 {dimension_numbers = #tpu.dot_dimension_numbers<[1], [1], [0], [0], [0, 0, 1, 0], [], []>} : vector<8x8xbf16>, vector<128x8xbf16>, vector<8x128xf32> -> vector<8x128xf32>
      %c0_21 = arith.constant 0 : index
      %c0_22 = arith.constant 0 : index
      %29 = vector.load %arg9[%c0_21, %c0_22] : memref<8x128xf32, #tpu.memory_space<vmem>>, vector<8x128xf32>
      %30 = arith.addf %29, %28 : vector<8x128xf32>
      %c0_23 = arith.constant 0 : index
      %c0_24 = arith.constant 0 : index
      %31 = vector.load %arg5[%c0_23, %c0_24] : memref<1x128xf32, #tpu.memory_space<vmem>>, vector<1x128xf32>
      %32 = vector.broadcast %31 : vector<1x128xf32> to vector<8x128xf32>
      %33 = arith.addf %30, %32 : vector<8x128xf32>
      %c0_25 = arith.constant 0 : index
      %c0_26 = arith.constant 0 : index
      %34 = vector.load %arg8[%c0_25, %c0_26] : memref<8x128xf32, #tpu.memory_space<vmem>>, vector<8x128xf32>
      tpu.vector_store %arg8[%c0_25, %c0_26], %33 {strides = array<i32>} : memref<8x128xf32, #tpu.memory_space<vmem>>, vector<8x128xf32>,
    } else {
    }
    return
  }
  func.func @transform_0(%arg0: i32, %arg1: i32, %arg2: i32) -> (i32, i32) {
    %c0_i32 = arith.constant 0 : i32
    return %arg0, %arg2 : i32, i32
  }
  func.func @transform_1(%arg0: i32, %arg1: i32, %arg2: i32) -> (i32, i32) {
    %c0_i32 = arith.constant 0 : i32
    return %arg1, %arg2 : i32, i32
  }
  func.func @transform_2(%arg0: i32, %arg1: i32, %arg2: i32) -> (i32, i32) {
    %c0_i32 = arith.constant 0 : i32
    %c0_i32_0 = arith.constant 0 : i32
    return %c0_i32, %arg1 : i32, i32
  }
  func.func @transform_3(%arg0: i32, %arg1: i32, %arg2: i32) -> (i32, i32) {
    %c0_i32 = arith.constant 0 : i32
    %c0_i32_0 = arith.constant 0 : i32
    return %c0_i32, %arg2 : i32, i32
  }
  func.func @transform_4(%arg0: i32, %arg1: i32, %arg2: i32) -> (i32, i32) {
    %c0_i32 = arith.constant 0 : i32
    %c0_i32_0 = arith.constant 0 : i32
    return %arg1, %c0_i32 : i32, i32
  }
  func.func @transform_5(%arg0: i32, %arg1: i32, %arg2: i32) -> (i32, i32) {
    %c0_i32 = arith.constant 0 : i32
    return %arg0, %arg1 : i32, i32
  }
}

</mosaic_0001>

<bundles_post_ra>
// kernel: tpu_custom_call.1
= control target key start
LH: loop header
LB: loop body
LE: loop exit
PB: predicated region body
PF: predicated region fallthrough
CT: control target
= control target key end

     0   :  { %10 = vsyncpa [#allocation5], 0  ;;  %s607_s0 = inlined_call_operand.vmem [shape: f32[8,128], index: 0, kind: input, shape index: {}]   ;;  %s608_s1 = inlined_call_operand.vmem [shape: f32[128,128], index: 1, kind: input, shape index: {}]   ;;  %s609_s2 = inlined_call_operand.vmem [shape: f32[1,128], index: 2, kind: input, shape index: {}]   ;;  %s610_s3 = inlined_call_operand.hbm [shape: f32[8,128], index: 3, kind: input, shape index: {}]   ;;  %s611_s4 = inlined_call_operand.vmem [shape: f32[128,8], index: 4, kind: input, shape index: {}]   ;;  %s612_s5 = inlined_call_operand.hbm [shape: f32[8,128], index: 5, kind: output, shape index: {}]  }
   0x1   :  { %11 = vsyncpa [#allocation6], 0  ;;  %s408_s18 = smov [#allocation4]   ;;  %s360_s22 = scalar_lea.hbm %s610_s3, 128 }
   0x2   :  { %s24_s19 = sshll.u32 %s408_s18, 4  ;;  %p361_p0 = scmp.ne.s32.totalorder %s610_s3, %s360_s22  ;;  %s25_s19 = int_to_ptr.vmem [resolvable:$true] %s24_s19 }
   0x3   :  { %p364_p1 = scmp.lt.u32.totalorder %s360_s22, %s610_s3 }
   0x5   :  { %p366_p2 = pnand %p364_p1, %p361_p0 }
   0x7   :  { %369 = shalt.err (!%p366_p2)
}
   0x8   :  { %s370_s27 = scalar_lea.vmem %s25_s19, 128  ;;  %p375_p4 = scmp.lt.s32.totalorder %s25_s19, %s25_s19 }
   0x9   :  { %p371_p3 = scmp.ne.s32.totalorder %s25_s19, %s370_s27  ;;  %p376_p5 = scmp.lt.s32.totalorder %s370_s27, %s370_s27 }
   0xb   :  { %p377_p6 = por %p376_p5, %p375_p4 }
   0xd   :  { %p378_p7 = pnand %p377_p6, %p371_p3 }
   0xf   :  { %381 = shalt.err (!%p378_p7)
}
  0x10   :  { %27 = dma.hbm_to_vmem [thread:$0]  %s610_s3, 128, %s25_s19, [#allocation5]  }
  0x11   :  { %404 = dma.done.wait [#allocation5], 128  }
  0x12   :  { %405 = vsyncadd [#allocation5], 4294967168  ;;  %vm44_vm0 = vcmask 64512   ;;  %v409_v0 = vmov 0.0   ;;  %vm410_vm1 = vmmov 0   ;;  %v118_v1 = vld [vmem:[#allocation4] sm:$0xff] }
  0x13   :  { %330 = vmatprep.subr.bf16.mxu1 %v409_v0  ;;  %332 = vmatprep.mubr.msk.bf16.mxu1 %vm410_vm1, %v409_v0  ;;  %45 = vst.msk [vmem:[#allocation3] sm:$0xff] %vm44_vm0, %v409_v0  ;;  %v48_v2 = vld [vmem:[%s608_s1] sm:$0xff]  ;;  %v119_v3 = vpack.c.bf16 %v118_v1, %v118_v1  ;;  %v49_v4 = vld [vmem:[%s608_s1 + $0x8] sm:$0xff]  ;;  %v50_v10 = vld [vmem:[%s608_s1 + $0x10] sm:$0xff]  ;;  %s411_s16 = smov [#allocation7]  }
  0x14   :  { %310 = vmatprep.subr.bf16.mxu0 %v409_v0  ;;  %326 = vmatprep.mubr.msk.bf16.mxu0 %vm410_vm1, %v409_v0  ;;  %v170_v5 = vld [vmem:[%s611_s4] sm:$0xff]  ;;  %v171_v6 = vld [vmem:[%s611_s4 + $0x8] sm:$0xff]  ;;  %v64_v7 = vpack.c.bf16 %v49_v4, %v48_v2  ;;  %v51_v11 = vld [vmem:[%s608_s1 + $0x18] sm:$0xff]  ;;  %s279_s17 = sshll.u32 %s411_s16, 4  ;;  %s280_s17 = int_to_ptr.vmem [resolvable:$true] %s279_s17 }
  0x15   :  { %331 = vmatpush3.bf16.xpose.msra.mxu1 %v119_v3  ;;  %v46_v8 = vld [vmem:[%s607_s0] sm:$0xff]  ;;  %v186_v9 = vpack.c.bf16 %v171_v6, %v170_v5  ;;  %v65_v14 = vpack.c.bf16 %v51_v11, %v50_v10  ;;  %v172_v15 = vld [vmem:[%s611_s4 + $0x10] sm:$0xff]  ;;  %v173_v16 = vld [vmem:[%s611_s4 + $0x18] sm:$0xff]  ;;  %s382_s0 = scalar_lea.vmem %s280_s17, 128  ;;  %p387_p9 = scmp.lt.s32.totalorder %s280_s17, %s280_s17 }
  0x16   :  { %311 = vmatpush3.bf16.xpose.msra.mxu0 %v64_v7  ;;  %336 = vmatprep.subr.bf16.mxu1 %v409_v0  ;;  %v485_v12 = vpack.c.bf16 %v46_v8, %v46_v8  ;;  %v187_v17 = vpack.c.bf16 %v173_v16, %v172_v15  ;;  %v52_v18 = vld [vmem:[%s608_s1 + $0x20] sm:$0xff]  ;;  %v53_v19 = vld [vmem:[%s608_s1 + $0x28] sm:$0xff]  ;;  %v54_v25 = vld [vmem:[%s608_s1 + $0x30] sm:$0xff]  ;;  %p383_p8 = scmp.ne.s32.totalorder %s280_s17, %s382_s0  ;;  %p388_p10 = scmp.lt.s32.totalorder %s382_s0, %s382_s0 }
  0x17   :  { %312 = vmatprep.subr.bf16.mxu0 %v409_v0  ;;  %v199_v13 = vsel %vm44_vm0, %v186_v9, 0  ;;  %v66_v21 = vpack.c.bf16 %v53_v19, %v52_v18  ;;  %v174_v22 = vld [vmem:[%s611_s4 + $0x20] sm:$0xff]  ;;  %v175_v23 = vld [vmem:[%s611_s4 + $0x28] sm:$0xff]  ;;  %v55_v26 = vld [vmem:[%s608_s1 + $0x38] sm:$0xff] }
  0x18   :  { %v202_v20 = vsel %vm44_vm0, %v187_v17, 0  ;;  %v188_v24 = vpack.c.bf16 %v175_v23, %v174_v22  ;;  %v67_v28 = vpack.c.bf16 %v55_v26, %v54_v25  ;;  %v176_v29 = vld [vmem:[%s611_s4 + $0x30] sm:$0xff]  ;;  %v177_v30 = vld [vmem:[%s611_s4 + $0x38] sm:$0xff]  ;;  %v56_v32 = vld [vmem:[%s608_s1 + $0x40] sm:$0xff]  ;;  %p389_p11 = por %p388_p10, %p387_p9 }
  0x19   :  { %v189_v31 = vpack.c.bf16 %v177_v30, %v176_v29  ;;  %v57_v33 = vld [vmem:[%s608_s1 + $0x48] sm:$0xff]  ;;  %v178_v36 = vld [vmem:[%s611_s4 + $0x40] sm:$0xff]  ;;  %v58_v39 = vld [vmem:[%s608_s1 + $0x50] sm:$0xff] }
  0x1a   :  { %v205_v27 = vsel %vm44_vm0, %v188_v24, 0  ;;  %v68_v35 = vpack.c.bf16 %v57_v33, %v56_v32  ;;  %v179_v37 = vld [vmem:[%s611_s4 + $0x48] sm:$0xff]  ;;  %v59_v40 = vld [vmem:[%s608_s1 + $0x58] sm:$0xff]  ;;  %v180_v43 = vld [vmem:[%s611_s4 + $0x50] sm:$0xff]  ;;  %p390_p12 = pnand %p389_p11, %p383_p8 }
  0x1b   :  { %v208_v34 = vsel %vm44_vm0, %v189_v31, 0  ;;  %v190_v38 = vpack.c.bf16 %v179_v37, %v178_v36  ;;  %v69_v42 = vpack.c.bf16 %v59_v40, %v58_v39  ;;  %v181_v44 = vld [vmem:[%s611_s4 + $0x58] sm:$0xff]  ;;  %v60_v46 = vld [vmem:[%s608_s1 + $0x60] sm:$0xff]  ;;  %v61_v47 = vld [vmem:[%s608_s1 + $0x68] sm:$0xff] }
  0x1c   :  { %333 = vmatmul.mubr.bf16.vlgmr.msra.gmra.mrb[0].mxu1 %v485_v12  ;;  %v191_v45 = vpack.c.bf16 %v181_v44, %v180_v43  ;;  %v70_v49 = vpack.c.bf16 %v61_v47, %v60_v46  ;;  %v182_v50 = vld [vmem:[%s611_s4 + $0x60] sm:$0xff]  ;;  %v183_v51 = vld [vmem:[%s611_s4 + $0x68] sm:$0xff]  ;;  %v62_v54 = vld [vmem:[%s608_s1 + $0x70] sm:$0xff] }
  0x1d   :  { %337 = vmatpush3.bf16.xpose.msra.mxu1 %v199_v13  ;;  %352 = vmatprep.mubr.msk.bf16.mxu1 %vm410_vm1, %v409_v0  ;;  %v211_v41 = vsel %vm44_vm0, %v190_v38, 0  ;;  %v192_v52 = vpack.c.bf16 %v183_v51, %v182_v50  ;;  %v63_v55 = vld [vmem:[%s608_s1 + $0x78] sm:$0xff]  ;;  %v184_v57 = vld [vmem:[%s611_s4 + $0x70] sm:$0xff]  ;;  %v120_v61 = vld [vmem:[#allocation3] sm:$0xff] }
  0x1e   :  { %313 = vmatpush3.bf16.xpose.msra.mxu0 %v65_v14  ;;  %338 = vmatprep.subr.bf16.mxu1 %v409_v0  ;;  %v214_v48 = vsel %vm44_vm0, %v191_v45, 0  ;;  %v71_v56 = vpack.c.bf16 %v63_v55, %v62_v54  ;;  %v185_v58 = vld [vmem:[%s611_s4 + $0x78] sm:$0xff]  ;;  %v289_v11 = vld [vmem:[%s609_s2] ss:$0 sm:$0xff] }
  0x1f   :  { %314 = vmatprep.subr.bf16.mxu0 %v409_v0  ;;  %v217_v53 = vsel %vm44_vm0, %v192_v52, 0  ;;  %v193_v59 = vpack.c.bf16 %v185_v58, %v184_v57 }
  0x21   :  { %v220_v60 = vsel %vm44_vm0, %v193_v59, 0 }
  0x25   :  { %339 = vmatpush3.bf16.xpose.msra.mxu1 %v202_v20 }
  0x26   :  { %315 = vmatpush3.bf16.xpose.msra.mxu0 %v66_v21  ;;  %340 = vmatprep.subr.bf16.mxu1 %v409_v0 }
  0x27   :  { %316 = vmatprep.subr.bf16.mxu0 %v409_v0 }
  0x2d   :  { %341 = vmatpush3.bf16.xpose.msra.mxu1 %v205_v27 }
  0x2e   :  { %317 = vmatpush3.bf16.xpose.msra.mxu0 %v67_v28  ;;  %342 = vmatprep.subr.bf16.mxu1 %v409_v0 }
  0x2f   :  { %318 = vmatprep.subr.bf16.mxu0 %v409_v0 }
  0x35   :  { %343 = vmatpush3.bf16.xpose.msra.mxu1 %v208_v34 }
  0x36   :  { %319 = vmatpush3.bf16.xpose.msra.mxu0 %v68_v35  ;;  %344 = vmatprep.subr.bf16.mxu1 %v409_v0 }
  0x37   :  { %320 = vmatprep.subr.bf16.mxu0 %v409_v0 }
  0x3d   :  { %345 = vmatpush3.bf16.xpose.msra.mxu1 %v211_v41 }
  0x3e   :  { %321 = vmatpush3.bf16.xpose.msra.mxu0 %v69_v42  ;;  %346 = vmatprep.subr.bf16.mxu1 %v409_v0 }
  0x3f   :  { %322 = vmatprep.subr.bf16.mxu0 %v409_v0 }
  0x45   :  { %347 = vmatpush3.bf16.xpose.msra.mxu1 %v214_v48 }
  0x46   :  { %323 = vmatpush3.bf16.xpose.msra.mxu0 %v70_v49  ;;  %348 = vmatprep.subr.bf16.mxu1 %v409_v0 }
  0x47   :  { %324 = vmatprep.subr.bf16.mxu0 %v409_v0 }
  0x4d   :  { %349 = vmatpush3.bf16.xpose.msra.mxu1 %v217_v53 }
  0x4e   :  { %350 = vmatprep.subr.bf16.mxu1 %v409_v0  ;;  %325 = vmatpush3.bf16.xpose.msra.mxu0 %v71_v56 }
  0x55   :  { %351 = vmatpush3.bf16.xpose.msra.mxu1 %v220_v60  ;;  %327 = vmatmul.mubr.bf16.vlgmr.msra.gmra.mrb[0].mxu0 %v485_v12 }
  0xef   :  { %v155_v62 = vpop.f32.mrb[0].mxu1 }
  0xf0   :  { %v161_v63 = vadd.f32 %v155_v62, %v120_v61  ;;  %v334_v0 = vpop.f32.mrb[1].mxu1 }
  0xf1   :  { %v158_v1 = vpop.f32.mrb[2].mxu1 }
  0xf2   :  { %163 = vst.msk [vmem:[#allocation3] sm:$0xff] %vm44_vm0, %v161_v63  ;;  %v335_v2 = vpop.f32.mrb[3].mxu1 }
  0xf9   :  { %v167_v3 = vld [vmem:[#allocation3] sm:$0xff] }
  0xfa   :  { %v168_v4 = vmul.f32 2.0, %v167_v3 }
  0xfc   :  { %v169_v5 = vpack.c.bf16 %v168_v4, %v168_v4 }
  0xfe   :  { %353 = vmatmul.mubr.msk.bf16.vlgmr.msra.gmra.mrb[4].mxu1 %vm44_vm0, %v169_v5 }
 0x128   :  { %v107_v6 = vpop.f32.mrb[0].mxu0 }
 0x129   :  { %v328_v7 = vpop.f32.mrb[1].mxu0 }
 0x12a   :  { %v110_v8 = vpop.f32.mrb[2].mxu0 }
 0x12b   :  { %v329_v9 = vpop.f32.mrb[3].mxu0 }
 0x1d1   :  { %v256_v10 = vpop.f32.mrb[4].mxu1 }
 0x1d2   :  { %v263_v12 = vadd.f32 %v256_v10, %v107_v6  ;;  %v354_v13 = vpop.f32.mrb[5].mxu1 }
 0x1d3   :  { %v259_v14 = vpop.f32.mrb[6].mxu1 }
 0x1d4   :  { %v271_v15 = vadd.f32 %v289_v11, %v263_v12  ;;  %v355_v16 = vpop.f32.mrb[7].mxu1 }
 0x1d6   :  { %272 = vst [vmem:[#allocation7] sm:$0xff] %v271_v15 }
 0x1d7   :  { %393 = shalt.err (!%p390_p12)
}
 0x1d8   :  { %s394_s2 = scalar_lea.hbm %s612_s5, 128 }
 0x1d9   :  { %p395_p13 = scmp.ne.s32.totalorder %s612_s5, %s394_s2  ;;  %p398_p0 = scmp.lt.u32.totalorder %s394_s2, %s612_s5 }
 0x1db   :  { %p400_p1 = pnand %p398_p0, %p395_p13 }
 0x1dd   :  { %403 = shalt.err (!%p400_p1)
}
 0x1de   :  { %282 = dma.vmem_to_hbm [thread:$0]  %s280_s17, 128, %s612_s5, [#allocation6]  }
 0x1df   :  { %406 = dma.done.wait [#allocation6], 128  }
 0x1e0   :  { %407 = vsyncadd [#allocation6], 4294967168 }
 0x1e1   :  { %286 = vsyncpa [#allocation5], 1 }
 0x1e2   :  { %287 = vsyncpa [#allocation6], 1 }

</bundles_post_ra>
